<compile_context>
chip_gen: v5e
topology: v5e:2x2
jax: 0.10.0
libtpu: 0.0.40
codegen_flags: <defaults>
</compile_context>

<pallas_src>
import functools

import jax
import jax.numpy as jnp
from jax import lax
from jax.experimental import pallas as pl
from jax.experimental.pallas import tpu as pltpu

NEG_INF = -1.0e30


def _round_up(x: int, m: int) -> int:
    return ((x + m - 1) // m) * m


def _vmem_capacity_bytes(default: int = 64 * 1024 * 1024) -> int:
    try:
        info = pltpu.get_tpu_info()
        return int(getattr(info, "vmem_capacity_bytes", default))
    except Exception:
        return default


def _infonce_kernel(z_cols_ref, pos_ref, col_bias_ref, loss_ref, *,
                    inv_temp: float, k: int, n2b: int, batch: int, tile_m: int):
    i = pl.program_id(0)
    n2b_pad = z_cols_ref.shape[0]

    # Row tile = sub-block of the (pre-normalized) resident column operand — no separate input.
    row_start = pl.multiple_of(i * tile_m, tile_m)
    zr = z_cols_ref[pl.ds(row_start, tile_m), :]                       # [TILE_M, D_pad]
    zc = z_cols_ref[...]                                               # [2B_pad, D_pad]

    # Fold 1/temperature into the small row operand (scaled in f32, then cast to the MXU dtype).
    zr = (zr.astype(jnp.float32) * inv_temp).astype(zc.dtype)

    # Similarity tile on the MXU: contract dim 1 of both operands, f32 accumulation.
    sim = lax.dot_general(zr, zc,
                          dimension_numbers=(((1,), (1,)), ((), ())),
                          preferred_element_type=jnp.float32)          # [TILE_M, 2B_pad] f32

    # Masks: diagonal + positive column per row; padded columns via the static additive bias.
    row_g = lax.broadcasted_iota(jnp.int32, (tile_m, 1), 0) + i * tile_m
    pos_col = jnp.where(row_g < batch, row_g + batch, row_g - batch)   # == (r+B) mod 2B
    col = lax.broadcasted_iota(jnp.int32, (tile_m, n2b_pad), 1)
    s = jnp.where((col != row_g) & (col != pos_col), sim, NEG_INF) + col_bias_ref[...]

    # Hard-negative top-k: read-only iterative max extraction (no write-back of the sim tile).
    # If ties exhaust the candidates early, m underflows to NEG_INF and exp(m - n1) -> 0 (benign).
    m = jnp.max(s, axis=-1, keepdims=True)                             # [TILE_M, 1]
    n1 = m                                                             # max negative (anchor)
    acc = jnp.ones_like(m)                                             # sum_j exp(neg_j - n1)
    for _ in range(k - 1):
        m = jnp.max(jnp.where(s < m, s, NEG_INF), axis=-1, keepdims=True)
        acc = acc + jnp.exp(m - n1)

    # loss_r = logsumexp([pos, top-k negs]) - pos   (pos is exact f32 from the wrapper)
    pos = pos_ref[...]                                                 # [TILE_M, 1]
    big = jnp.maximum(pos, n1)
    lse = big + jnp.log(jnp.exp(pos - big) + acc * jnp.exp(n1 - big))
    loss_ref[...] = jnp.where(row_g < n2b, lse - pos, 0.0)             # zero padded rows


def infonce_loss_pallas(z_i, z_j, temperature: float = 0.07, n_hard_negatives: int = 10,
                        tile_m: int = 256, use_bf16_matmul: bool = True):
    z_i = jnp.asarray(z_i, jnp.float32)
    z_j = jnp.asarray(z_j, jnp.float32)
    batch, d = z_i.shape
    n2b = 2 * batch
    k = min(n_hard_negatives, n2b - 2)
    if k <= 0:  # PyTorch module returns 0.0 when no negatives exist (batch < 2)
        return jnp.float32(0.0)

    inv_temp = float(1.0 / temperature)

    # --- hoisted preprocessing (one fused XLA pass, O(2B*D)) ---
    z_all = jnp.concatenate([z_i, z_j], axis=0)                                    # [2B, D]
    z_all = z_all / jnp.maximum(
        jnp.sqrt(jnp.sum(z_all * z_all, axis=-1, keepdims=True)), 1e-12)           # F.normalize
    # exact f32 positive logit per row: partner of row r is (r + B) mod 2B
    pos = jnp.sum(z_all * jnp.roll(z_all, -batch, axis=0),
                  axis=-1, keepdims=True) * inv_temp                               # [2B, 1]

    # --- padding: lanes to 128, rows to the row tile (zero rows stay zero / masked) ---
    d_pad = _round_up(d, 128)
    tile_m = min(tile_m, _round_up(n2b, 8))
    n2b_pad = _round_up(n2b, tile_m)
    num_tiles = n2b_pad // tile_m

    z_cols = jnp.pad(z_all, ((0, n2b_pad - n2b), (0, d_pad - d)))
    if use_bf16_matmul:
        z_cols = z_cols.astype(jnp.bfloat16)      # bf16-native MXU + half the resident VMEM
    pos = jnp.pad(pos, ((0, n2b_pad - n2b), (0, 0)))

    # grid-invariant additive bias: NEG_INF on padded columns, 0 elsewhere
    col_bias = jnp.where(jnp.arange(n2b_pad) < n2b, 0.0, NEG_INF
                         ).astype(jnp.float32)[None, :]                            # [1, 2B_pad]

    # VMEM budget: resident column block (+double buffers) + per-tile temporaries, clamped to HW.
    col_bytes = n2b_pad * d_pad * z_cols.dtype.itemsize
    est = (2 * col_bytes + 12 * tile_m * n2b_pad * 4
           + 4 * tile_m * d_pad * 4 + (2 << 20))
    vmem_limit = int(min(_vmem_capacity_bytes() - (4 << 20), max(est, 32 << 20)))

    kernel = functools.partial(_infonce_kernel, inv_temp=inv_temp, k=k,
                               n2b=n2b, batch=batch, tile_m=tile_m)

    per_row_loss = pl.pallas_call(
        kernel,
        out_shape=jax.ShapeDtypeStruct((n2b_pad, 1), jnp.float32),
        grid=(num_tiles,),
        in_specs=[
            pl.BlockSpec((n2b_pad, d_pad), lambda i: (0, 0)),   # resident columns (DMA'd once)
            pl.BlockSpec((tile_m, 1), lambda i: (i, 0)),        # exact f32 positive logits
            pl.BlockSpec((1, n2b_pad), lambda i: (0, 0)),       # padded-column bias (resident)
        ],
        out_specs=pl.BlockSpec((tile_m, 1), lambda i: (i, 0)),
        compiler_params=pltpu.CompilerParams(
            dimension_semantics=("parallel",),
            vmem_limit_bytes=vmem_limit),
    )(z_cols, pos, col_bias)

    return jnp.sum(per_row_loss) / n2b


def infonce_loss_ref(z_i, z_j, temperature: float = 0.07, n_hard_negatives: int = 10):
    """Pure-JAX reference mirroring the PyTorch module (hard-negative branch)."""
    z_i = z_i / jnp.maximum(jnp.linalg.norm(z_i, axis=1, keepdims=True), 1e-12)
    z_j = z_j / jnp.maximum(jnp.linalg.norm(z_j, axis=1, keepdims=True), 1e-12)
    z = jnp.concatenate([z_i, z_j], axis=0)
    n2b = z.shape[0]
    b = n2b // 2
    sim = (z @ z.T) / temperature
    idx = jnp.arange(n2b)
    pos = sim[idx, (idx + b) % n2b]
    pos_mask = jnp.arange(n2b)[None, :] == ((idx + b) % n2b)[:, None]
    diag_mask = jnp.eye(n2b, dtype=bool)
    neg_mask = ~(pos_mask | diag_mask)
    s = jnp.where(neg_mask, sim, -jnp.inf)
    k = min(n_hard_negatives, n2b - 2)
    topk, _ = lax.top_k(s, k)
    logits = jnp.concatenate([pos[:, None], topk], axis=1)
    return jnp.mean(jax.nn.logsumexp(logits, axis=1) - pos)


if __name__ == "__main__":
    key = jax.random.PRNGKey(0)
    k1, k2 = jax.random.split(key)
    batch, embed_dim = 8, 32
    z_i = jax.random.normal(k1, (batch, embed_dim), dtype=jnp.float32)
    z_j = jax.random.normal(k2, (batch, embed_dim), dtype=jnp.float32)

    loss = jax.block_until_ready(infonce_loss_pallas(z_i, z_j))              # default bf16 MXU
    loss_f32 = jax.block_until_ready(
        infonce_loss_pallas(z_i, z_j, use_bf16_matmul=False))                # exact f32 path
    ref = infonce_loss_ref(z_i, z_j)

    assert jnp.isfinite(loss), "bf16 kernel produced non-finite loss"
    assert jnp.isfinite(loss_f32), "f32 kernel produced non-finite loss"
    assert jnp.allclose(loss_f32, ref, rtol=1e-4, atol=1e-4), (loss_f32, ref)
    assert jnp.allclose(loss, ref, rtol=5e-2, atol=5e-2), (loss, ref)

    print("KERNEL_OK")
</pallas_src>

<mosaic_0001>
module attributes {stable_mosaic.version = 11 : i64} {
  func.func @_infonce_kernel(%arg0: i32, %arg1: memref<16x128xbf16, #tpu.memory_space<vmem>>, %arg2: memref<16x1xf32, #tpu.memory_space<vmem>>, %arg3: memref<1x16xf32, #tpu.memory_space<vmem>>, %arg4: memref<16x1xf32, #tpu.memory_space<vmem>>) attributes {dimension_semantics = [#tpu.dimension_semantics<parallel>], iteration_bounds = array<i64: 1>, scalar_prefetch = 0 : i64, scratch_operands = 0 : i64, tpu.core_type = #tpu.core_type<tc>, window_params = [{pipeline_mode = #tpu.pipeline_mode<synchronous>, transform_indices = @transform_0, window_bounds = array<i64: 16, 128>}, {transform_indices = @transform_1, window_bounds = array<i64: 16, 1>}, {pipeline_mode = #tpu.pipeline_mode<synchronous>, transform_indices = @transform_2, window_bounds = array<i64: 1, 16>}, {transform_indices = @transform_3, window_bounds = array<i64: 16, 1>}]} {
    %c16_i32 = arith.constant 16 : i32
    %0 = arith.muli %arg0, %c16_i32 : i32
    %1 = tpu.assume_multiple %0, 16 : i32
    %2 = arith.index_cast %1 : i32 to index
    %c0 = arith.constant 0 : index
    %3 = vector.load %arg1[%2, %c0] : memref<16x128xbf16, #tpu.memory_space<vmem>>, vector<16x128xbf16>
    %c0_0 = arith.constant 0 : index
    %c0_1 = arith.constant 0 : index
    %4 = vector.load %arg1[%c0_0, %c0_1] : memref<16x128xbf16, #tpu.memory_space<vmem>>, vector<16x128xbf16>
    %5 = arith.extf %3 : vector<16x128xbf16> to vector<16x128xf32>
    %cst = arith.constant 14.2857141 : f32
    %6 = vector.broadcast %cst : f32 to vector<16x128xf32>
    %7 = arith.mulf %5, %6 : vector<16x128xf32>
    %8 = arith.truncf %7 : vector<16x128xf32> to vector<16x128xbf16>
    %cst_2 = arith.constant dense<0.000000e+00> : vector<16x16xf32>
    %9 = tpu.matmul %8, %4, %cst_2 {dimension_numbers = #tpu.dot_dimension_numbers<[1], [1], [0], [0], [0, 0, 1, 0], [], []>} : vector<16x128xbf16>, vector<16x128xbf16>, vector<16x16xf32> -> vector<16x16xf32>
    %10 = tpu.iota {dimensions = array<i32: 0>} : vector<16x1xi32>
    %c16_i32_3 = arith.constant 16 : i32
    %11 = arith.muli %arg0, %c16_i32_3 : i32
    %12 = vector.broadcast %11 : i32 to vector<16x1xi32>
    %13 = arith.addi %10, %12 : vector<16x1xi32>
    %c8_i32 = arith.constant 8 : i32
    %14 = vector.broadcast %c8_i32 : i32 to vector<16x1xi32>
    %15 = arith.cmpi slt, %13, %14 : vector<16x1xi32>
    %c8_i32_4 = arith.constant 8 : i32
    %16 = vector.broadcast %c8_i32_4 : i32 to vector<16x1xi32>
    %17 = arith.addi %13, %16 : vector<16x1xi32>
    %c8_i32_5 = arith.constant 8 : i32
    %18 = vector.broadcast %c8_i32_5 : i32 to vector<16x1xi32>
    %19 = arith.subi %13, %18 : vector<16x1xi32>
    %20 = arith.select %15, %17, %19 : vector<16x1xi1>, vector<16x1xi32>
    %21 = tpu.iota {dimensions = array<i32: 1>} : vector<16x16xi32>
    %22 = vector.broadcast %13 : vector<16x1xi32> to vector<16x16xi32>
    %23 = arith.cmpi ne, %21, %22 : vector<16x16xi32>
    %24 = vector.broadcast %20 : vector<16x1xi32> to vector<16x16xi32>
    %25 = arith.cmpi ne, %21, %24 : vector<16x16xi32>
    %26 = arith.andi %23, %25 : vector<16x16xi1>
    %cst_6 = arith.constant -1.000000e+30 : f32
    %27 = vector.broadcast %cst_6 : f32 to vector<16x16xf32>
    %28 = arith.select %26, %9, %27 : vector<16x16xi1>, vector<16x16xf32>
    %c0_7 = arith.constant 0 : index
    %c0_8 = arith.constant 0 : index
    %29 = vector.load %arg3[%c0_7, %c0_8] : memref<1x16xf32, #tpu.memory_space<vmem>>, vector<1x16xf32>
    %30 = vector.broadcast %29 : vector<1x16xf32> to vector<16x16xf32>
    %31 = arith.addf %28, %30 : vector<16x16xf32>
    %cst_9 = arith.constant dense<0xFF800000> : vector<16xf32>
    %32 = vector.multi_reduction <maximumf>, %31, %cst_9 [1] : vector<16x16xf32> to vector<16xf32>
    %33 = vector.shape_cast %32 : vector<16xf32> to vector<16x1xf32>
    %cst_10 = arith.constant 1.000000e+00 : f32
    %34 = vector.broadcast %cst_10 : f32 to vector<16x1xf32>
    %35 = vector.broadcast %33 : vector<16x1xf32> to vector<16x16xf32>
    %36 = arith.cmpf olt, %31, %35 : vector<16x16xf32>
    %cst_11 = arith.constant -1.000000e+30 : f32
    %37 = vector.broadcast %cst_11 : f32 to vector<16x16xf32>
    %38 = arith.select %36, %31, %37 : vector<16x16xi1>, vector<16x16xf32>
    %cst_12 = arith.constant dense<0xFF800000> : vector<16xf32>
    %39 = vector.multi_reduction <maximumf>, %38, %cst_12 [1] : vector<16x16xf32> to vector<16xf32>
    %40 = vector.shape_cast %39 : vector<16xf32> to vector<16x1xf32>
    %41 = arith.subf %40, %33 : vector<16x1xf32>
    %42 = math.exp %41 : vector<16x1xf32>
    %43 = arith.addf %34, %42 : vector<16x1xf32>
    %44 = vector.broadcast %40 : vector<16x1xf32> to vector<16x16xf32>
    %45 = arith.cmpf olt, %31, %44 : vector<16x16xf32>
    %cst_13 = arith.constant -1.000000e+30 : f32
    %46 = vector.broadcast %cst_13 : f32 to vector<16x16xf32>
    %47 = arith.select %45, %31, %46 : vector<16x16xi1>, vector<16x16xf32>
    %cst_14 = arith.constant dense<0xFF800000> : vector<16xf32>
    %48 = vector.multi_reduction <maximumf>, %47, %cst_14 [1] : vector<16x16xf32> to vector<16xf32>
    %49 = vector.shape_cast %48 : vector<16xf32> to vector<16x1xf32>
    %50 = arith.subf %49, %33 : vector<16x1xf32>
    %51 = math.exp %50 : vector<16x1xf32>
    %52 = arith.addf %43, %51 : vector<16x1xf32>
    %53 = vector.broadcast %49 : vector<16x1xf32> to vector<16x16xf32>
    %54 = arith.cmpf olt, %31, %53 : vector<16x16xf32>
    %cst_15 = arith.constant -1.000000e+30 : f32
    %55 = vector.broadcast %cst_15 : f32 to vector<16x16xf32>
    %56 = arith.select %54, %31, %55 : vector<16x16xi1>, vector<16x16xf32>
    %cst_16 = arith.constant dense<0xFF800000> : vector<16xf32>
    %57 = vector.multi_reduction <maximumf>, %56, %cst_16 [1] : vector<16x16xf32> to vector<16xf32>
    %58 = vector.shape_cast %57 : vector<16xf32> to vector<16x1xf32>
    %59 = arith.subf %58, %33 : vector<16x1xf32>
    %60 = math.exp %59 : vector<16x1xf32>
    %61 = arith.addf %52, %60 : vector<16x1xf32>
    %62 = vector.broadcast %58 : vector<16x1xf32> to vector<16x16xf32>
    %63 = arith.cmpf olt, %31, %62 : vector<16x16xf32>
    %cst_17 = arith.constant -1.000000e+30 : f32
    %64 = vector.broadcast %cst_17 : f32 to vector<16x16xf32>
    %65 = arith.select %63, %31, %64 : vector<16x16xi1>, vector<16x16xf32>
    %cst_18 = arith.constant dense<0xFF800000> : vector<16xf32>
    %66 = vector.multi_reduction <maximumf>, %65, %cst_18 [1] : vector<16x16xf32> to vector<16xf32>
    %67 = vector.shape_cast %66 : vector<16xf32> to vector<16x1xf32>
    %68 = arith.subf %67, %33 : vector<16x1xf32>
    %69 = math.exp %68 : vector<16x1xf32>
    %70 = arith.addf %61, %69 : vector<16x1xf32>
    %71 = vector.broadcast %67 : vector<16x1xf32> to vector<16x16xf32>
    %72 = arith.cmpf olt, %31, %71 : vector<16x16xf32>
    %cst_19 = arith.constant -1.000000e+30 : f32
    %73 = vector.broadcast %cst_19 : f32 to vector<16x16xf32>
    %74 = arith.select %72, %31, %73 : vector<16x16xi1>, vector<16x16xf32>
    %cst_20 = arith.constant dense<0xFF800000> : vector<16xf32>
    %75 = vector.multi_reduction <maximumf>, %74, %cst_20 [1] : vector<16x16xf32> to vector<16xf32>
    %76 = vector.shape_cast %75 : vector<16xf32> to vector<16x1xf32>
    %77 = arith.subf %76, %33 : vector<16x1xf32>
    %78 = math.exp %77 : vector<16x1xf32>
    %79 = arith.addf %70, %78 : vector<16x1xf32>
    %80 = vector.broadcast %76 : vector<16x1xf32> to vector<16x16xf32>
    %81 = arith.cmpf olt, %31, %80 : vector<16x16xf32>
    %cst_21 = arith.constant -1.000000e+30 : f32
    %82 = vector.broadcast %cst_21 : f32 to vector<16x16xf32>
    %83 = arith.select %81, %31, %82 : vector<16x16xi1>, vector<16x16xf32>
    %cst_22 = arith.constant dense<0xFF800000> : vector<16xf32>
    %84 = vector.multi_reduction <maximumf>, %83, %cst_22 [1] : vector<16x16xf32> to vector<16xf32>
    %85 = vector.shape_cast %84 : vector<16xf32> to vector<16x1xf32>
    %86 = arith.subf %85, %33 : vector<16x1xf32>
    %87 = math.exp %86 : vector<16x1xf32>
    %88 = arith.addf %79, %87 : vector<16x1xf32>
    %89 = vector.broadcast %85 : vector<16x1xf32> to vector<16x16xf32>
    %90 = arith.cmpf olt, %31, %89 : vector<16x16xf32>
    %cst_23 = arith.constant -1.000000e+30 : f32
    %91 = vector.broadcast %cst_23 : f32 to vector<16x16xf32>
    %92 = arith.select %90, %31, %91 : vector<16x16xi1>, vector<16x16xf32>
    %cst_24 = arith.constant dense<0xFF800000> : vector<16xf32>
    %93 = vector.multi_reduction <maximumf>, %92, %cst_24 [1] : vector<16x16xf32> to vector<16xf32>
    %94 = vector.shape_cast %93 : vector<16xf32> to vector<16x1xf32>
    %95 = arith.subf %94, %33 : vector<16x1xf32>
    %96 = math.exp %95 : vector<16x1xf32>
    %97 = arith.addf %88, %96 : vector<16x1xf32>
    %98 = vector.broadcast %94 : vector<16x1xf32> to vector<16x16xf32>
    %99 = arith.cmpf olt, %31, %98 : vector<16x16xf32>
    %cst_25 = arith.constant -1.000000e+30 : f32
    %100 = vector.broadcast %cst_25 : f32 to vector<16x16xf32>
    %101 = arith.select %99, %31, %100 : vector<16x16xi1>, vector<16x16xf32>
    %cst_26 = arith.constant dense<0xFF800000> : vector<16xf32>
    %102 = vector.multi_reduction <maximumf>, %101, %cst_26 [1] : vector<16x16xf32> to vector<16xf32>
    %103 = vector.shape_cast %102 : vector<16xf32> to vector<16x1xf32>
    %104 = arith.subf %103, %33 : vector<16x1xf32>
    %105 = math.exp %104 : vector<16x1xf32>
    %106 = arith.addf %97, %105 : vector<16x1xf32>
    %107 = vector.broadcast %103 : vector<16x1xf32> to vector<16x16xf32>
    %108 = arith.cmpf olt, %31, %107 : vector<16x16xf32>
    %cst_27 = arith.constant -1.000000e+30 : f32
    %109 = vector.broadcast %cst_27 : f32 to vector<16x16xf32>
    %110 = arith.select %108, %31, %109 : vector<16x16xi1>, vector<16x16xf32>
    %cst_28 = arith.constant dense<0xFF800000> : vector<16xf32>
    %111 = vector.multi_reduction <maximumf>, %110, %cst_28 [1] : vector<16x16xf32> to vector<16xf32>
    %112 = vector.shape_cast %111 : vector<16xf32> to vector<16x1xf32>
    %113 = arith.subf %112, %33 : vector<16x1xf32>
    %114 = math.exp %113 : vector<16x1xf32>
    %115 = arith.addf %106, %114 : vector<16x1xf32>
    %c0_29 = arith.constant 0 : index
    %c0_30 = arith.constant 0 : index
    %116 = vector.load %arg2[%c0_29, %c0_30] : memref<16x1xf32, #tpu.memory_space<vmem>>, vector<16x1xf32>
    %117 = arith.maximumf %116, %33 : vector<16x1xf32>
    %118 = arith.subf %116, %117 : vector<16x1xf32>
    %119 = math.exp %118 : vector<16x1xf32>
    %120 = arith.subf %33, %117 : vector<16x1xf32>
    %121 = math.exp %120 : vector<16x1xf32>
    %122 = arith.mulf %115, %121 : vector<16x1xf32>
    %123 = arith.addf %119, %122 : vector<16x1xf32>
    %124 = math.log %123 : vector<16x1xf32>
    %125 = arith.addf %117, %124 : vector<16x1xf32>
    %c16_i32_31 = arith.constant 16 : i32
    %126 = vector.broadcast %c16_i32_31 : i32 to vector<16x1xi32>
    %127 = arith.cmpi slt, %13, %126 : vector<16x1xi32>
    %128 = arith.subf %125, %116 : vector<16x1xf32>
    %cst_32 = arith.constant 0.000000e+00 : f32
    %129 = vector.broadcast %cst_32 : f32 to vector<16x1xf32>
    %130 = arith.select %127, %128, %129 : vector<16x1xi1>, vector<16x1xf32>
    %c0_33 = arith.constant 0 : index
    %c0_34 = arith.constant 0 : index
    %131 = vector.load %arg4[%c0_33, %c0_34] : memref<16x1xf32, #tpu.memory_space<vmem>>, vector<16x1xf32>
    tpu.vector_store %arg4[%c0_33, %c0_34], %130 {strides = array<i32>} : memref<16x1xf32, #tpu.memory_space<vmem>>, vector<16x1xf32>,
    return
  }
  func.func @transform_0(%arg0: i32) -> (i32, i32) {
    %c0_i32 = arith.constant 0 : i32
    %c0_i32_0 = arith.constant 0 : i32
    %c0_i32_1 = arith.constant 0 : i32
    return %c0_i32, %c0_i32_0 : i32, i32
  }
  func.func @transform_1(%arg0: i32) -> (i32, i32) {
    %c0_i32 = arith.constant 0 : i32
    %c0_i32_0 = arith.constant 0 : i32
    return %arg0, %c0_i32 : i32, i32
  }
  func.func @transform_2(%arg0: i32) -> (i32, i32) {
    %c0_i32 = arith.constant 0 : i32
    %c0_i32_0 = arith.constant 0 : i32
    %c0_i32_1 = arith.constant 0 : i32
    return %c0_i32, %c0_i32_0 : i32, i32
  }
  func.func @transform_3(%arg0: i32) -> (i32, i32) {
    %c0_i32 = arith.constant 0 : i32
    %c0_i32_0 = arith.constant 0 : i32
    return %arg0, %c0_i32 : i32, i32
  }
}

</mosaic_0001>

<bundles_post_ra>
// kernel: tpu_custom_call.1
= control target key start
LH: loop header
LB: loop body
LE: loop exit
PB: predicated region body
PF: predicated region fallthrough
CT: control target
= control target key end

     0   :  { %v49_v7 = vlaneseq  ;;  %vm79_vm3 = vcmask 130048   ;;  %s534_s0 = inlined_call_operand.vmem [shape: bf16[16,128], index: 0, kind: input, shape index: {}]   ;;  %s535_s2 = inlined_call_operand.vmem [shape: f32[1,16], index: 2, kind: input, shape index: {}]   ;;  %s536_s1 = inlined_call_operand.vmem [shape: f32[16,1], index: 1, kind: input, shape index: {}]   ;;  %s537_s3 = inlined_call_operand.vmem [shape: f32[16,1], index: 3, kind: output, shape index: {}]  }
   0x1   :  { %v295_v0 = vld [vmem:[%s534_s0] sm:$0xff] }
   0x2   :  { %v297_v1 = vld [vmem:[%s534_s0] sm:$0xff]   ;;  %42 = vmatpush.bf16.xpose.msra.mxu0 %v295_v0  ;;  %v50_v8 = vshrl.u32 %v49_v7, 7  ;;  %v64_v10 = vand.u32 127, %v49_v7 }
   0x3   :  { %v298_v2 = vunpack.c.l.bf16 %v297_v1  ;;  %v299_v3 = vunpack.c.h.bf16 %v297_v1  ;;  %v300_v11 = vld [vmem:[%s535_s2] ss:$0 sm:$0xff] }
   0x4   :  { %v51_v9 = vadd.s32 8, %v50_v8  ;;  %vm65_vm0 = vcmp.ne.s32.totalorder %v64_v10, %v50_v8 }
   0x5   :  { %v26_v4 = vmul.f32 14.285714, %v298_v2  ;;  %v27_v5 = vmul.f32 14.285714, %v299_v3 }
   0x6   :  { %vm66_vm1 = vcmp.ne.s32.totalorder %v64_v10, %v51_v9  ;;  %v294_v12 = vadd.s32 4294967288, %v51_v9 }
   0x7   :  { %v28_v6 = vpack.c.bf16 %v27_v5, %v26_v4  ;;  %vm69_vm2 = vmand %vm65_vm0, %vm66_vm1 }
   0x8   :  { %vm68_vm4 = vcmp.ne.s32.totalorder %v64_v10, %v294_v12 }
   0x9   :  { %43 = vmatmul.bf16.vlgmr.msra.gmra.mxu0 %v28_v6  ;;  %vm70_vm5 = vmand %vm66_vm1, %vm68_vm4 }
  0x86   :  { %v44_v13 = vpop.f32.mrf.mxu0 }
  0x87   :  { %v71_v14 = vsel %vm69_vm2, %v44_v13, -1e+30 }
  0x88   :  { %v378_v15 = vadd.f32 %v300_v11, %v71_v14 }
  0x8a   :  { %v80_v16 = vsel %vm79_vm3, %v378_v15, -inf }
  0x8b   :  { %81 = vmax.xlane.f32.xlu0 %v80_v16 }
  0x8e   :  { %v46_v17 = vpop.f32.mrf.mxu0 }
  0x8f   :  { %v72_v18 = vsel %vm70_vm5, %v46_v17, -1e+30 }
  0x90   :  { %v382_v19 = vadd.f32 %v300_v11, %v72_v18 }
  0x92   :  { %v83_v20 = vsel %vm79_vm3, %v382_v19, -inf }
  0x93   :  { %84 = vmax.xlane.f32.xlu0 %v83_v20 }
  0xfe   :  { %v386_v21 = vpop.xlane.xlu0 %81 }
  0xff   :  { %vm86_vm6 = vcmp.lt.f32.partialorder %v378_v15, %v386_v21 }
 0x100   :  { %v88_v22 = vsel %vm86_vm6, %v378_v15, -1e+30 }
 0x101   :  { %v90_v23 = vsel %vm79_vm3, %v88_v22, -inf }
 0x102   :  { %91 = vmax.xlane.f32.xlu1 %v90_v23 }
 0x106   :  { %v392_v24 = vpop.xlane.xlu0 %84 }
 0x107   :  { %vm87_vm7 = vcmp.lt.f32.partialorder %v382_v19, %v392_v24 }
 0x108   :  { %v89_v25 = vsel %vm87_vm7, %v382_v19, -1e+30 }
 0x109   :  { %v93_v26 = vsel %vm79_vm3, %v89_v25, -inf }
 0x10a   :  { %94 = vmax.xlane.f32.xlu1 %v93_v26 }
 0x175   :  { %v92_v27 = vpop.xlane.xlu1 %91 }
 0x176   :  { %vm104_vm8 = vcmp.lt.f32.partialorder %v378_v15, %v92_v27  ;;  %v96_v33 = vsub.f32 %v92_v27, %v386_v21 }
 0x177   :  { %v106_v28 = vsel %vm104_vm8, %v378_v15, -1e+30 }
 0x178   :  { %v108_v29 = vsel %vm79_vm3, %v106_v28, -inf  ;;  %v98_v34 = vmul.f32 1.442695, %v96_v33 }
 0x179   :  { %109 = vmax.xlane.f32.xlu2 %v108_v29 }
 0x17a   :  { %301 = vpow2.f32 %v98_v34 }
 0x17d   :  { %v401_v30 = vpop.xlane.xlu1 %94 }
 0x17e   :  { %vm105_vm9 = vcmp.lt.f32.partialorder %v382_v19, %v401_v30 }
 0x17f   :  { %v107_v31 = vsel %vm105_vm9, %v382_v19, -1e+30 }
 0x180   :  { %v111_v32 = vsel %vm79_vm3, %v107_v31, -inf  ;;  %v302_v40 = vpop.eup %301 }
 0x181   :  { %112 = vmax.xlane.f32.xlu2 %v111_v32  ;;  %v102_v42 = vadd.f32 1.0, %v302_v40 }
 0x1ec   :  { %v110_v35 = vpop.xlane.xlu2 %109 }
 0x1ed   :  { %v114_v36 = vsub.f32 %v110_v35, %v386_v21  ;;  %vm122_vm10 = vcmp.lt.f32.partialorder %v378_v15, %v110_v35 }
 0x1ee   :  { %v124_v37 = vsel %vm122_vm10, %v378_v15, -1e+30 }
 0x1ef   :  { %v116_v38 = vmul.f32 1.442695, %v114_v36  ;;  %v126_v39 = vsel %vm79_vm3, %v124_v37, -inf }
 0x1f0   :  { %127 = vmax.xlane.f32.xlu0 %v126_v39 }
 0x1f1   :  { %303 = vpow2.f32 %v116_v38 }
 0x1f4   :  { %v412_v41 = vpop.xlane.xlu2 %112 }
 0x1f5   :  { %vm123_vm11 = vcmp.lt.f32.partialorder %v382_v19, %v412_v41  ;;  %v115_v27 = vsub.f32 %v412_v41, %v392_v24 }
 0x1f6   :  { %v125_v43 = vsel %vm123_vm11, %v382_v19, -1e+30 }
 0x1f7   :  { %v304_v44 = vpop.eup %303  ;;  %v129_v45 = vsel %vm79_vm3, %v125_v43, -inf  ;;  %v118_v34 = vmul.f32 1.442695, %v115_v27 }
 0x1f8   :  { %v418_v46 = vadd.f32 %v304_v44, %v102_v42  ;;  %130 = vmax.xlane.f32.xlu1 %v129_v45 }
 0x263   :  { %v420_v47 = vpop.xlane.xlu0 %127 }
 0x264   :  { %vm140_vm12 = vcmp.lt.f32.partialorder %v378_v15, %v420_v47  ;;  %v132_v22 = vsub.f32 %v420_v47, %v386_v21 }
 0x265   :  { %v142_v48 = vsel %vm140_vm12, %v378_v15, -1e+30 }
 0x266   :  { %v144_v49 = vsel %vm79_vm3, %v142_v48, -inf  ;;  %v134_v25 = vmul.f32 1.442695, %v132_v22 }
 0x267   :  { %145 = vmax.xlane.f32.xlu2 %v144_v49 }
 0x268   :  { %305 = vpow2.f32 %v134_v25 }
 0x26b   :  { %v426_v50 = vpop.xlane.xlu1 %130 }
 0x26c   :  { %vm141_vm13 = vcmp.lt.f32.partialorder %v382_v19, %v426_v50  ;;  %v133_v31 = vsub.f32 %v426_v50, %v392_v24 }
 0x26d   :  { %v143_v51 = vsel %vm141_vm13, %v382_v19, -1e+30 }
 0x26e   :  { %v147_v52 = vsel %vm79_vm3, %v143_v51, -inf  ;;  %v136_v38 = vmul.f32 1.442695, %v133_v31  ;;  %v306_v44 = vpop.eup %305 }
 0x26f   :  { %148 = vmax.xlane.f32.xlu0 %v147_v52  ;;  %v138_v52 = vadd.f32 %v306_v44, %v418_v46 }
 0x2da   :  { %v146_v53 = vpop.xlane.xlu2 %145 }
 0x2db   :  { %vm158_vm14 = vcmp.lt.f32.partialorder %v378_v15, %v146_v53  ;;  %v150_v23 = vsub.f32 %v146_v53, %v386_v21 }
 0x2dc   :  { %v160_v54 = vsel %vm158_vm14, %v378_v15, -1e+30 }
 0x2dd   :  { %v162_v55 = vsel %vm79_vm3, %v160_v54, -inf  ;;  %v152_v28 = vmul.f32 1.442695, %v150_v23 }
 0x2de   :  { %163 = vmax.xlane.f32.xlu1 %v162_v55 }
 0x2df   :  { %307 = vpow2.f32 %v152_v28 }
 0x2e2   :  { %v435_v56 = vpop.xlane.xlu0 %148 }
 0x2e3   :  { %vm159_vm15 = vcmp.lt.f32.partialorder %v382_v19, %v435_v56  ;;  %v151_v35 = vsub.f32 %v435_v56, %v392_v24  ;;  %v515_v56 = vld [vmem:[%s536_s1 + $0x8] sm:$0xff] }
 0x2e4   :  { %v161_v57 = vsel %vm159_vm15, %v382_v19, -1e+30 }
 0x2e5   :  { %v165_v58 = vsel %vm79_vm3, %v161_v57, -inf  ;;  %v154_v42 = vmul.f32 1.442695, %v151_v35  ;;  %v308_v48 = vpop.eup %307 }
 0x2e6   :  { %166 = vmax.xlane.f32.xlu2 %v165_v58  ;;  %v156_v46 = vadd.f32 %v308_v48, %v138_v52 }
 0x351   :  { %v164_v59 = vpop.xlane.xlu1 %163 }
 0x352   :  { %vm176_vm0 = vcmp.lt.f32.partialorder %v378_v15, %v164_v59  ;;  %v168_v26 = vsub.f32 %v164_v59, %v386_v21 }
 0x353   :  { %v178_v60 = vsel %vm176_vm0, %v378_v15, -1e+30 }
 0x354   :  { %v180_v61 = vsel %vm79_vm3, %v178_v60, -inf  ;;  %v170_v32 = vmul.f32 1.442695, %v168_v26 }
 0x355   :  { %181 = vmax.xlane.f32.xlu0 %v180_v61 }
 0x359   :  { %v444_v62 = vpop.xlane.xlu2 %166 }
 0x35a   :  { %vm177_vm1 = vcmp.lt.f32.partialorder %v382_v19, %v444_v62  ;;  %v169_v40 = vsub.f32 %v444_v62, %v392_v24 }
 0x35b   :  { %v179_v63 = vsel %vm177_vm1, %v382_v19, -1e+30 }
 0x35c   :  { %v183_v0 = vsel %vm79_vm3, %v179_v63, -inf  ;;  %v172_v49 = vmul.f32 1.442695, %v169_v40 }
 0x35d   :  { %184 = vmax.xlane.f32.xlu1 %v183_v0 }
 0x3c8   :  { %v182_v1 = vpop.xlane.xlu0 %181 }
 0x3c9   :  { %vm194_vm2 = vcmp.lt.f32.partialorder %v378_v15, %v182_v1 }
 0x3ca   :  { %v196_v2 = vsel %vm194_vm2, %v378_v15, -1e+30 }
 0x3cb   :  { %v198_v3 = vsel %vm79_vm3, %v196_v2, -inf }
 0x3cc   :  { %199 = vmax.xlane.f32.xlu2 %v198_v3 }
 0x3d0   :  { %v453_v4 = vpop.xlane.xlu1 %184 }
 0x3d1   :  { %vm195_vm4 = vcmp.lt.f32.partialorder %v382_v19, %v453_v4  ;;  %v187_v43 = vsub.f32 %v453_v4, %v392_v24 }
 0x3d2   :  { %v197_v5 = vsel %vm195_vm4, %v382_v19, -1e+30 }
 0x3d3   :  { %v201_v6 = vsel %vm79_vm3, %v197_v5, -inf  ;;  %v190_v53 = vmul.f32 1.442695, %v187_v43 }
 0x3d4   :  { %202 = vmax.xlane.f32.xlu0 %v201_v6 }
 0x43f   :  { %v200_v7 = vpop.xlane.xlu2 %199 }
 0x440   :  { %vm212_vm5 = vcmp.lt.f32.partialorder %v378_v15, %v200_v7  ;;  %v204_v33 = vsub.f32 %v200_v7, %v386_v21 }
 0x441   :  { %v214_v8 = vsel %vm212_vm5, %v378_v15, -1e+30 }
 0x442   :  { %v216_v9 = vsel %vm79_vm3, %v214_v8, -inf  ;;  %v206_v41 = vmul.f32 1.442695, %v204_v33 }
 0x443   :  { %217 = vmax.xlane.f32.xlu1 %v216_v9 }
 0x447   :  { %v462_v10 = vpop.xlane.xlu0 %202 }
 0x448   :  { %vm213_vm6 = vcmp.lt.f32.partialorder %v382_v19, %v462_v10  ;;  %v205_v50 = vsub.f32 %v462_v10, %v392_v24 }
 0x449   :  { %v215_v11 = vsel %vm213_vm6, %v382_v19, -1e+30 }
 0x44a   :  { %v219_v12 = vsel %vm79_vm3, %v215_v11, -inf  ;;  %v208_v63 = vmul.f32 1.442695, %v205_v50 }
 0x44b   :  { %220 = vmax.xlane.f32.xlu2 %v219_v12 }
 0x4b6   :  { %v218_v13 = vpop.xlane.xlu1 %217 }
 0x4b7   :  { %vm230_vm7 = vcmp.lt.f32.partialorder %v378_v15, %v218_v13  ;;  %v222_v37 = vsub.f32 %v218_v13, %v386_v21 }
 0x4b8   :  { %v232_v14 = vsel %vm230_vm7, %v378_v15, -1e+30  ;;  %v97_v15 = vsub.f32 %v401_v30, %v392_v24  ;;  %v492_v30 = vld [vmem:[%s536_s1] sm:$0xff] }
 0x4b9   :  { %v234_v16 = vsel %vm79_vm3, %v232_v14, -inf  ;;  %v499_v39 = vmax.f32 %v492_v30, %v386_v21  ;;  %v224_v45 = vmul.f32 1.442695, %v222_v37 }
 0x4ba   :  { %235 = vmax.xlane.f32.xlu0 %v234_v16  ;;  %v100_v29 = vmul.f32 1.442695, %v97_v15 }
 0x4bb   :  { %v258_v47 = vsub.f32 %v386_v21, %v499_v39  ;;  %v252_v54 = vsub.f32 %v492_v30, %v499_v39 }
 0x4bc   :  { %309 = vpow2.f32 %v100_v29 }
 0x4bd   :  { %311 = vpow2.f32 %v170_v32  ;;  %v260_v61 = vmul.f32 1.442695, %v258_v47  ;;  %v254_v5 = vmul.f32 1.442695, %v252_v54 }
 0x4be   :  { %v471_v17 = vpop.xlane.xlu2 %220  ;;  %313 = vpow2.f32 %v118_v34 }
 0x4bf   :  { %vm231_vm8 = vcmp.lt.f32.partialorder %v382_v19, %v471_v17  ;;  %v223_v58 = vsub.f32 %v471_v17, %v392_v24 }
 0x4c0   :  { %v233_v18 = vsel %vm231_vm8, %v382_v19, -1e+30  ;;  %v186_v19 = vsub.f32 %v182_v1, %v386_v21  ;;  %v251_v1 = vmax.f32 %v515_v56, %v392_v24 }
 0x4c1   :  { %v237_v20 = vsel %vm79_vm3, %v233_v18, -inf  ;;  %v226_v7 = vmul.f32 1.442695, %v223_v58  ;;  %vm280_vm3 = vcmask 7168  }
 0x4c2   :  { %238 = vmax.xlane.f32.xlu1 %v237_v20  ;;  %v188_v36 = vmul.f32 1.442695, %v186_v19  ;;  %v310_v51 = vpop.eup %309  ;;  %v259_v11 = vsub.f32 %v392_v24, %v251_v1  ;;  %v253_v17 = vsub.f32 %v515_v56, %v251_v1 }
 0x4c3   :  { %v312_v57 = vpop.eup %311  ;;  %v103_v3 = vadd.f32 1.0, %v310_v51 }
 0x4c4   :  { %315 = vpow2.f32 %v188_v36  ;;  %v314_v60 = vpop.eup %313  ;;  %v174_v4 = vadd.f32 %v312_v57, %v156_v46  ;;  %v262_v25 = vmul.f32 1.442695, %v259_v11  ;;  %v256_v31 = vmul.f32 1.442695, %v253_v17 }
 0x4c5   :  { %317 = vpow2.f32 %v136_v38 }
 0x4c6   :  { %319 = vpow2.f32 %v206_v41 }
 0x4c7   :  { %321 = vpow2.f32 %v154_v42 }
 0x4c8   :  { %323 = vpow2.f32 %v224_v45 }
 0x4c9   :  { %325 = vpow2.f32 %v172_v49 }
 0x4ca   :  { %v316_v62 = vpop.eup %315  ;;  %327 = vpow2.f32 %v190_v53 }
 0x4cb   :  { %v318_v2 = vpop.eup %317  ;;  %v192_v9 = vadd.f32 %v316_v62, %v174_v4 }
 0x4cc   :  { %v320_v6 = vpop.eup %319 }
 0x4cd   :  { %v322_v8 = vpop.eup %321  ;;  %v210_v13 = vadd.f32 %v320_v6, %v192_v9 }
 0x4ce   :  { %v324_v10 = vpop.eup %323 }
 0x4cf   :  { %v326_v16 = vpop.eup %325  ;;  %v228_v23 = vadd.f32 %v324_v10, %v210_v13 }
 0x4d0   :  { %v328_v20 = vpop.eup %327 }
 0x52d   :  { %v236_v55 = vpop.xlane.xlu0 %235 }
 0x52e   :  { %v240_v59 = vsub.f32 %v236_v55, %v386_v21  ;;  %v121_v21 = vadd.f32 %v314_v60, %v103_v3 }
 0x530   :  { %v242_v0 = vmul.f32 1.442695, %v240_v59  ;;  %v139_v12 = vadd.f32 %v318_v2, %v121_v21 }
 0x532   :  { %329 = vpow2.f32 %v242_v0  ;;  %v157_v22 = vadd.f32 %v322_v8, %v139_v12 }
 0x533   :  { %331 = vpow2.f32 %v260_v61 }
 0x534   :  { %333 = vpow2.f32 %v208_v63  ;;  %v175_v28 = vadd.f32 %v326_v16, %v157_v22 }
 0x535   :  { %335 = vpow2.f32 %v254_v5  ;;  %v239_v14 = vpop.xlane.xlu1 %238 }
 0x536   :  { %337 = vpow2.f32 %v226_v7  ;;  %v241_v18 = vsub.f32 %v239_v14, %v392_v24  ;;  %v193_v33 = vadd.f32 %v328_v20, %v175_v28 }
 0x538   :  { %v330_v15 = vpop.eup %329  ;;  %v244_v26 = vmul.f32 1.442695, %v241_v18 }
 0x539   :  { %v332_v27 = vpop.eup %331  ;;  %v246_v19 = vadd.f32 %v330_v15, %v228_v23 }
 0x53a   :  { %v334_v29 = vpop.eup %333  ;;  %339 = vpow2.f32 %v244_v26 }
 0x53b   :  { %v336_v32 = vpop.eup %335  ;;  %v264_v34 = vmul.f32 %v332_v27, %v246_v19  ;;  %341 = vpow2.f32 %v262_v25  ;;  %v211_v36 = vadd.f32 %v334_v29, %v193_v33 }
 0x53c   :  { %v338_v35 = vpop.eup %337  ;;  %343 = vpow2.f32 %v256_v31 }
 0x53d   :  { %v266_v37 = vadd.f32 %v336_v32, %v264_v34  ;;  %v229_v24 = vadd.f32 %v338_v35, %v211_v36 }
 0x53f   :  { %345 = vlog2.f32 %v266_v37 }
 0x540   :  { %v340_v38 = vpop.eup %339 }
 0x541   :  { %v247_v40 = vadd.f32 %v340_v38, %v229_v24  ;;  %v342_v41 = vpop.eup %341 }
 0x542   :  { %v344_v43 = vpop.eup %343 }
 0x543   :  { %v265_v42 = vmul.f32 %v342_v41, %v247_v40 }
 0x545   :  { %v346_v44 = vpop.eup %345  ;;  %v267_v45 = vadd.f32 %v344_v43, %v265_v42 }
 0x546   :  { %v269_v47 = vmul.f32 0.6931472, %v346_v44 }
 0x547   :  { %347 = vlog2.f32 %v267_v45 }
 0x548   :  { %v272_v48 = vadd.f32 %v269_v47, %v499_v39 }
 0x54a   :  { %v276_v49 = vsub.f32 %v272_v48, %v492_v30 }
 0x54c   :  { %281 = vst.msk [vmem:[%s537_s3] sm:$0xff] %vm280_vm3, %v276_v49 }
 0x54d   :  { %v348_v50 = vpop.eup %347 }
 0x54e   :  { %v271_v51 = vmul.f32 0.6931472, %v348_v50 }
 0x550   :  { %v273_v52 = vadd.f32 %v271_v51, %v251_v1 }
 0x552   :  { %v277_v53 = vsub.f32 %v273_v52, %v515_v56 }
 0x554   :  { %282 = vst.msk [vmem:[%s537_s3 + $0x8] sm:$0xff] %vm280_vm3, %v277_v53 }

</bundles_post_ra>
